<compile_context>
chip_gen: v7x
topology: tpu7x:2x2x1
jax: 0.10.0
libtpu: 0.0.40
codegen_flags: <defaults>
</compile_context>

<pallas_src>
import functools

import jax
import jax.numpy as jnp
from jax.experimental import pallas as pl
from jax.experimental.pallas import tpu as pltpu

# Finite stand-in for -inf: exp(_MASK - m) underflows to exactly 0 in f32 and
# avoids any inf-inf NaN risk in the online-softmax rescale.
_MASK = -1e30


def _spatial_gather_kernel(probs_ref, feats_ref, out_ref,
                           m_ref, l_ref, acc_ref,
                           *, scale, hw, t_hw, needs_mask):
    """One (batch, c-chunk, hw-tile) grid step of the online-softmax gather.

    probs_ref: (1, K, T_HW)   feats_ref: (1, Ct, T_HW)   out_ref: (1, K, Ct)
    m_ref/l_ref: (K, 1) f32 running max / running sum (scratch)
    acc_ref:     (K, Ct) f32 un-normalized context accumulator (scratch)
    """
    t = pl.program_id(2)                                  # reduction axis (last)

    @pl.when(t == 0)
    def _init():
        m_ref[...] = jnp.full_like(m_ref, -jnp.inf)
        l_ref[...] = jnp.zeros_like(l_ref)
        acc_ref[...] = jnp.zeros_like(acc_ref)

    p = probs_ref[0].astype(jnp.float32)                  # (K, T_HW)
    if scale != 1.0:
        p = p * scale
    f = feats_ref[0]                                      # (Ct, T_HW), native dtype

    if needs_mask:
        # Last tile overhangs HW; Pallas does NOT zero out-of-bounds block
        # padding, so mask both the logits and the features.
        valid = hw - t * t_hw                             # >= T_HW except last tile
        lane = jax.lax.broadcasted_iota(jnp.int32, (1, t_hw), 1)
        ok = lane < valid                                 # (1, T_HW), broadcasts
        p = jnp.where(ok, p, _MASK)
        f = jnp.where(ok, f, jnp.zeros_like(f))

    m_prev = m_ref[...]                                   # (K, 1)
    m_new = jnp.maximum(m_prev, jnp.max(p, axis=-1, keepdims=True))
    alpha = jnp.exp(m_prev - m_new)                       # accumulator rescale
    e = jnp.exp(p - m_new)                                # (K, T_HW), in [0, 1]

    l_ref[...] = alpha * l_ref[...] + jnp.sum(e, axis=-1, keepdims=True)

    # (K, T_HW) x (Ct, T_HW), contracting T_HW -> (K, Ct); f32 MXU accumulation.
    partial = jax.lax.dot_general(
        e.astype(f.dtype), f,
        dimension_numbers=(((1,), (1,)), ((), ())),
        preferred_element_type=jnp.float32)
    acc_ref[...] = alpha * acc_ref[...] + partial
    m_ref[...] = m_new

    @pl.when(t == pl.num_programs(2) - 1)
    def _finalize():
        inv = pl.reciprocal(l_ref[...])                   # deferred normalization
        out_ref[0] = (acc_ref[...] * inv).astype(out_ref.dtype)


def _vmem_budgets():
    """(tile_budget_bytes, vmem_limit_bytes), derived from the actual part."""
    try:
        cap = int(pltpu.get_tpu_info().vmem_capacity_bytes)
    except Exception:
        cap = 64 * 1024 * 1024                 # v7x-safe fallback
    # Leave headroom for Mosaic internal scratch:  ~54 MiB limit on 64 MiB
    # parts (v7x), ~108 MiB on 128 MiB parts (v5e/v6e).
    limit = min(int(cap * 0.85), cap - 8 * 1024 * 1024)
    tile_budget = int(limit * 0.75)
    return tile_budget, limit


def _choose_hw_tile(hw, c_eff, k, itemsize, budget_bytes, max_tile=None):
    """Largest multiple-of-128 HW tile whose working set fits `budget_bytes`.

    Accounts for: double-buffered probs+feats input tiles, the in-kernel f32
    temporaries (p, e) and the e-cast, the f32 (K, Ct) accumulator, and the
    double-buffered (1, K, Ct) output block.  Independent of HW's divisors.
    """
    per_hw = 2 * (c_eff + k) * itemsize + (2 * 4 + itemsize) * k
    fixed = 4 * k * c_eff + 2 * k * c_eff * itemsize + 16 * k
    cap = (budget_bytes - fixed) // per_hw
    if max_tile is not None:
        cap = min(cap, max_tile)
    cap = min(cap, pl.cdiv(hw, 128) * 128)      # never bigger than padded HW
    return max(128, (cap // 128) * 128)


def _auto_c_splits(b, c):
    """Parallel C-split only helps on 2-TensorCore parts (v7x) with tiny B."""
    if b >= 2 or c % 256 != 0:
        return 1
    try:
        kind = jax.devices()[0].device_kind.lower()
    except Exception:
        kind = ""
    return 2 if "v7" in kind else 1


def spatial_gather(feats, probs, scale=1.0, *, max_hw_tile=None, c_splits=None):
    """feats: (B, C, H, W), probs: (B, K, H, W) -> (B, C, K, 1)."""
    B, C, H, W = feats.shape
    Bp, K, Hp, Wp = probs.shape
    assert B == Bp and (H, W) == (Hp, Wp), "feats/probs dims must match"
    HW = H * W

    probs_r = probs.reshape(B, K, HW)           # (B, K, HW)  -- free reshape
    feats_r = feats.reshape(B, C, HW)           # (B, C, HW)  -- free reshape, NO transpose

    if c_splits is None:
        c_splits = _auto_c_splits(B, C)
    if c_splits > 1 and (C % c_splits != 0 or (C // c_splits) % 128 != 0):
        c_splits = 1                            # keep output lane-dense
    Ct = C // c_splits

    tile_budget, vmem_limit = _vmem_budgets()
    t_hw = _choose_hw_tile(HW, Ct, K, feats.dtype.itemsize, tile_budget,
                           max_tile=max_hw_tile)
    n_t = pl.cdiv(HW, t_hw)
    needs_mask = (HW % t_hw) != 0

    kernel = functools.partial(_spatial_gather_kernel, scale=float(scale),
                               hw=HW, t_hw=t_hw, needs_mask=needs_mask)

    # NOTE: pl.Buffered(3) on the feats stream (v7x latency hiding) was
    # considered; only worth it when VMEM headroom remains after the tile
    # choice, so it is left at the default double-buffering here.
    ctx = pl.pallas_call(
        kernel,
        out_shape=jax.ShapeDtypeStruct((B, K, C), feats.dtype),
        grid_spec=pltpu.PrefetchScalarGridSpec(
            num_scalar_prefetch=0,
            grid=(B, c_splits, n_t),            # reduction (HW tiles) axis last
            in_specs=[
                pl.BlockSpec((1, K, t_hw), lambda b, c, t: (b, 0, t)),
                pl.BlockSpec((1, Ct, t_hw), lambda b, c, t: (b, c, t)),
            ],
            out_specs=pl.BlockSpec((1, K, Ct), lambda b, c, t: (b, 0, c)),
            scratch_shapes=[
                pltpu.VMEM((K, 1), jnp.float32),    # running max
                pltpu.VMEM((K, 1), jnp.float32),    # running sum
                pltpu.VMEM((K, Ct), jnp.float32),   # un-normalized context
            ],
        ),
        compiler_params=pltpu.CompilerParams(
            dimension_semantics=("parallel", "parallel", "arbitrary"),
            vmem_limit_bytes=int(vmem_limit),
        ),
    )(probs_r, feats_r)

    # Tiny (B, K, C) -> (B, C, K, 1) epilogue; negligible next to feats traffic.
    return jnp.transpose(ctx, (0, 2, 1))[..., None]


def _reference(feats, probs, scale=1.0):
    B, C, H, W = feats.shape
    K = probs.shape[1]
    p = probs.reshape(B, K, H * W).astype(jnp.float32)
    f = jnp.transpose(feats.reshape(B, C, H * W), (0, 2, 1)).astype(jnp.float32)
    p = jax.nn.softmax(scale * p, axis=2)
    ctx = jnp.einsum("bks,bsc->bkc", p, f)
    return jnp.transpose(ctx, (0, 2, 1))[..., None].astype(feats.dtype)


if __name__ == "__main__":
    key = jax.random.PRNGKey(0)
    k1, k2, k3, k4 = jax.random.split(key, 4)

    # 1) f32, HW = 255 (not a multiple of 128): cdiv grid + partial-tile mask
    #    with a single 256-wide tile.
    B, C, K, H, W = 2, 32, 4, 17, 15
    feats = jax.random.normal(k1, (B, C, H, W), dtype=jnp.float32)
    probs = jax.random.normal(k2, (B, K, H, W), dtype=jnp.float32)

    out = jax.block_until_ready(spatial_gather(feats, probs, scale=1.0))
    ref = _reference(feats, probs, scale=1.0)
    assert out.shape == (B, C, K, 1), out.shape
    assert jnp.allclose(out, ref, atol=2e-3, rtol=2e-3), "mismatch (single masked tile)"

    # 2) Force 2 HW tiles (128 + masked 127): online-softmax accumulation across
    #    tiles plus the partial-tile mask, with a non-trivial scale.
    out2 = jax.block_until_ready(spatial_gather(feats, probs, scale=2.0, max_hw_tile=128))
    ref2 = _reference(feats, probs, scale=2.0)
    assert jnp.allclose(out2, ref2, atol=2e-3, rtol=2e-3), "mismatch (tiled HW, masked)"

    # 3) bf16 inputs (the biggest HBM lever) + the parallel C-split path
    #    (v7x second-TensorCore recipe), forced here to exercise the code path.
    B3, C3, H3, W3 = 1, 256, 16, 16
    feats3 = jax.random.normal(k3, (B3, C3, H3, W3), dtype=jnp.float32).astype(jnp.bfloat16)
    probs3 = jax.random.normal(k4, (B3, K, H3, W3), dtype=jnp.float32).astype(jnp.bfloat16)
    out3 = jax.block_until_ready(
        spatial_gather(feats3, probs3, scale=1.0, max_hw_tile=128, c_splits=2))
    ref3 = _reference(feats3, probs3, scale=1.0)
    assert out3.shape == (B3, C3, K, 1), out3.shape
    assert jnp.allclose(out3.astype(jnp.float32), ref3.astype(jnp.float32),
                        atol=2e-2, rtol=2e-2), "mismatch (bf16, C-split)"

    print("KERNEL_OK")
</pallas_src>

<mosaic_0001>
module attributes {stable_mosaic.version = 11 : i64} {
  func.func @_spatial_gather_kernel(%arg0: i32, %arg1: i32, %arg2: i32, %arg3: memref<1x4x256xf32, #tpu.memory_space<vmem>>, %arg4: memref<1x32x256xf32, #tpu.memory_space<vmem>>, %arg5: memref<1x4x32xf32, #tpu.memory_space<vmem>>, %arg6: memref<4x1xf32, #tpu.memory_space<vmem>>, %arg7: memref<4x1xf32, #tpu.memory_space<vmem>>, %arg8: memref<4x32xf32, #tpu.memory_space<vmem>>) attributes {dimension_semantics = [#tpu.dimension_semantics<parallel>, #tpu.dimension_semantics<parallel>, #tpu.dimension_semantics<arbitrary>], iteration_bounds = array<i64: 2, 1, 1>, scalar_prefetch = 0 : i64, scratch_operands = 3 : i64, tpu.core_type = #tpu.core_type<tc>, window_params = [{transform_indices = @transform_0, window_bounds = array<i64: 1, 4, 256>}, {transform_indices = @transform_1, window_bounds = array<i64: 1, 32, 256>}, {transform_indices = @transform_2, window_bounds = array<i64: 1, 4, 32>}]} {
    %c0_i32 = arith.constant 0 : i32
    %0 = arith.cmpi eq, %arg2, %c0_i32 : i32
    %1 = arith.extui %0 : i1 to i32
    %c0_i32_0 = arith.constant 0 : i32
    %2 = arith.cmpi ne, %1, %c0_i32_0 : i32
    scf.if %2 {
      %cst_24 = arith.constant 0xFF800000 : f32
      %45 = vector.broadcast %cst_24 : f32 to vector<4x1xf32>
      %c0_25 = arith.constant 0 : index
      %c0_26 = arith.constant 0 : index
      %46 = vector.load %arg6[%c0_25, %c0_26] : memref<4x1xf32, #tpu.memory_space<vmem>>, vector<4x1xf32>
      tpu.vector_store %arg6[%c0_25, %c0_26], %45 {strides = array<i32>} : memref<4x1xf32, #tpu.memory_space<vmem>>, vector<4x1xf32>,
      %cst_27 = arith.constant 0.000000e+00 : f32
      %47 = vector.broadcast %cst_27 : f32 to vector<4x1xf32>
      %c0_28 = arith.constant 0 : index
      %c0_29 = arith.constant 0 : index
      %48 = vector.load %arg7[%c0_28, %c0_29] : memref<4x1xf32, #tpu.memory_space<vmem>>, vector<4x1xf32>
      tpu.vector_store %arg7[%c0_28, %c0_29], %47 {strides = array<i32>} : memref<4x1xf32, #tpu.memory_space<vmem>>, vector<4x1xf32>,
      %cst_30 = arith.constant 0.000000e+00 : f32
      %49 = vector.broadcast %cst_30 : f32 to vector<4x32xf32>
      %c0_31 = arith.constant 0 : index
      %c0_32 = arith.constant 0 : index
      %50 = vector.load %arg8[%c0_31, %c0_32] : memref<4x32xf32, #tpu.memory_space<vmem>>, vector<4x32xf32>
      tpu.vector_store %arg8[%c0_31, %c0_32], %49 {strides = array<i32>} : memref<4x32xf32, #tpu.memory_space<vmem>>, vector<4x32xf32>,
    } else {
    }
    %c0 = arith.constant 0 : index
    %c0_1 = arith.constant 0 : index
    %c0_2 = arith.constant 0 : index
    %3 = vector.load %arg3[%c0, %c0_1, %c0_2] : memref<1x4x256xf32, #tpu.memory_space<vmem>>, vector<1x4x256xf32>
    %4 = vector.shape_cast %3 : vector<1x4x256xf32> to vector<4x256xf32>
    %c0_3 = arith.constant 0 : index
    %c0_4 = arith.constant 0 : index
    %c0_5 = arith.constant 0 : index
    %5 = vector.load %arg4[%c0_3, %c0_4, %c0_5] : memref<1x32x256xf32, #tpu.memory_space<vmem>>, vector<1x32x256xf32>
    %6 = vector.shape_cast %5 : vector<1x32x256xf32> to vector<32x256xf32>
    %c256_i32 = arith.constant 256 : i32
    %7 = arith.muli %arg2, %c256_i32 : i32
    %c255_i32 = arith.constant 255 : i32
    %8 = arith.subi %c255_i32, %7 : i32
    %9 = tpu.iota {dimensions = array<i32: 1>} : vector<1x256xi32>
    %10 = vector.broadcast %8 : i32 to vector<1x256xi32>
    %11 = arith.cmpi slt, %9, %10 : vector<1x256xi32>
    %cst = arith.constant -1.000000e+30 : f32
    %12 = vector.shape_cast %11 : vector<1x256xi1> to vector<1x256xi1>
    %13 = vector.broadcast %12 : vector<1x256xi1> to vector<4x256xi1>
    %14 = vector.broadcast %cst : f32 to vector<4x256xf32>
    %15 = arith.select %13, %4, %14 : vector<4x256xi1>, vector<4x256xf32>
    %cst_6 = arith.constant 0.000000e+00 : f32
    %16 = vector.broadcast %cst_6 : f32 to vector<32x256xf32>
    %17 = vector.shape_cast %11 : vector<1x256xi1> to vector<1x256xi1>
    %18 = vector.broadcast %17 : vector<1x256xi1> to vector<32x256xi1>
    %19 = arith.select %18, %6, %16 : vector<32x256xi1>, vector<32x256xf32>
    %c0_7 = arith.constant 0 : index
    %c0_8 = arith.constant 0 : index
    %20 = vector.load %arg6[%c0_7, %c0_8] : memref<4x1xf32, #tpu.memory_space<vmem>>, vector<4x1xf32>
    %cst_9 = arith.constant dense<0xFF800000> : vector<4xf32>
    %21 = vector.multi_reduction <maximumf>, %15, %cst_9 [1] : vector<4x256xf32> to vector<4xf32>
    %22 = vector.shape_cast %21 : vector<4xf32> to vector<4x1xf32>
    %23 = arith.maximumf %20, %22 : vector<4x1xf32>
    %24 = arith.subf %20, %23 : vector<4x1xf32>
    %25 = math.exp %24 : vector<4x1xf32>
    %26 = vector.broadcast %23 : vector<4x1xf32> to vector<4x256xf32>
    %27 = arith.subf %15, %26 : vector<4x256xf32>
    %28 = math.exp %27 : vector<4x256xf32>
    %c0_10 = arith.constant 0 : index
    %c0_11 = arith.constant 0 : index
    %29 = vector.load %arg7[%c0_10, %c0_11] : memref<4x1xf32, #tpu.memory_space<vmem>>, vector<4x1xf32>
    %30 = arith.mulf %25, %29 : vector<4x1xf32>
    %cst_12 = arith.constant dense<0.000000e+00> : vector<4xf32>
    %31 = vector.multi_reduction <add>, %28, %cst_12 [1] : vector<4x256xf32> to vector<4xf32>
    %32 = vector.shape_cast %31 : vector<4xf32> to vector<4x1xf32>
    %33 = arith.addf %30, %32 : vector<4x1xf32>
    %c0_13 = arith.constant 0 : index
    %c0_14 = arith.constant 0 : index
    %34 = vector.load %arg7[%c0_13, %c0_14] : memref<4x1xf32, #tpu.memory_space<vmem>>, vector<4x1xf32>
    tpu.vector_store %arg7[%c0_13, %c0_14], %33 {strides = array<i32>} : memref<4x1xf32, #tpu.memory_space<vmem>>, vector<4x1xf32>,
    %cst_15 = arith.constant dense<0.000000e+00> : vector<4x32xf32>
    %35 = tpu.matmul %28, %19, %cst_15 {dimension_numbers = #tpu.dot_dimension_numbers<[1], [1], [0], [0], [0, 0, 1, 0], [], []>} : vector<4x256xf32>, vector<32x256xf32>, vector<4x32xf32> -> vector<4x32xf32>
    %c0_16 = arith.constant 0 : index
    %c0_17 = arith.constant 0 : index
    %36 = vector.load %arg8[%c0_16, %c0_17] : memref<4x32xf32, #tpu.memory_space<vmem>>, vector<4x32xf32>
    %37 = vector.broadcast %25 : vector<4x1xf32> to vector<4x32xf32>
    %38 = arith.mulf %37, %36 : vector<4x32xf32>
    %39 = arith.addf %38, %35 : vector<4x32xf32>
    %c0_18 = arith.constant 0 : index
    %c0_19 = arith.constant 0 : index
    %40 = vector.load %arg8[%c0_18, %c0_19] : memref<4x32xf32, #tpu.memory_space<vmem>>, vector<4x32xf32>
    tpu.vector_store %arg8[%c0_18, %c0_19], %39 {strides = array<i32>} : memref<4x32xf32, #tpu.memory_space<vmem>>, vector<4x32xf32>,
    %c0_20 = arith.constant 0 : index
    %c0_21 = arith.constant 0 : index
    %41 = vector.load %arg6[%c0_20, %c0_21] : memref<4x1xf32, #tpu.memory_space<vmem>>, vector<4x1xf32>
    tpu.vector_store %arg6[%c0_20, %c0_21], %23 {strides = array<i32>} : memref<4x1xf32, #tpu.memory_space<vmem>>, vector<4x1xf32>,
    %c0_i32_22 = arith.constant 0 : i32
    %42 = arith.cmpi eq, %arg2, %c0_i32_22 : i32
    %43 = arith.extui %42 : i1 to i32
    %c0_i32_23 = arith.constant 0 : i32
    %44 = arith.cmpi ne, %43, %c0_i32_23 : i32
    scf.if %44 {
      %c0_24 = arith.constant 0 : index
      %c0_25 = arith.constant 0 : index
      %45 = vector.load %arg7[%c0_24, %c0_25] : memref<4x1xf32, #tpu.memory_space<vmem>>, vector<4x1xf32>
      %46 = tpu.reciprocal %45 : vector<4x1xf32> -> vector<4x1xf32>
      %c0_26 = arith.constant 0 : index
      %c0_27 = arith.constant 0 : index
      %47 = vector.load %arg8[%c0_26, %c0_27] : memref<4x32xf32, #tpu.memory_space<vmem>>, vector<4x32xf32>
      %48 = vector.broadcast %46 : vector<4x1xf32> to vector<4x32xf32>
      %49 = arith.mulf %47, %48 : vector<4x32xf32>
      %c0_28 = arith.constant 0 : index
      %c0_29 = arith.constant 0 : index
      %c0_30 = arith.constant 0 : index
      %50 = vector.load %arg5[%c0_28, %c0_29, %c0_30] : memref<1x4x32xf32, #tpu.memory_space<vmem>>, vector<1x4x32xf32>
      %51 = vector.shape_cast %50 : vector<1x4x32xf32> to vector<4x32xf32>
      %52 = vector.shape_cast %49 : vector<4x32xf32> to vector<1x4x32xf32>
      tpu.vector_store %arg5[%c0_28, %c0_29, %c0_30], %52 {strides = array<i32>} : memref<1x4x32xf32, #tpu.memory_space<vmem>>, vector<1x4x32xf32>,
    } else {
    }
    return
  }
  func.func @transform_0(%arg0: i32, %arg1: i32, %arg2: i32) -> (i32, i32, i32) {
    %c0_i32 = arith.constant 0 : i32
    %c0_i32_0 = arith.constant 0 : i32
    return %arg0, %c0_i32, %arg2 : i32, i32, i32
  }
  func.func @transform_1(%arg0: i32, %arg1: i32, %arg2: i32) -> (i32, i32, i32) {
    %c0_i32 = arith.constant 0 : i32
    return %arg0, %arg1, %arg2 : i32, i32, i32
  }
  func.func @transform_2(%arg0: i32, %arg1: i32, %arg2: i32) -> (i32, i32, i32) {
    %c0_i32 = arith.constant 0 : i32
    %c0_i32_0 = arith.constant 0 : i32
    return %arg0, %c0_i32, %arg1 : i32, i32, i32
  }
}

</mosaic_0001>

<bundles_post_ra>
// kernel: tpu_custom_call.1
= control target key start
LH: loop header
LB: loop body
LE: loop exit
PB: predicated region body
PF: predicated region fallthrough
CT: control target
= control target key end

     0   :  { %7 = vsyncpa [#allocation6], 0  ;;  %s1070_s0 = inlined_call_operand.hbm [shape: f32[2,4,255], index: 0, kind: input, shape index: {}]   ;;  %s1071_s1 = inlined_call_operand.hbm [shape: f32[2,32,255], index: 1, kind: input, shape index: {}]   ;;  %s1072_s2 = inlined_call_operand.hbm [shape: f32[2,4,32], index: 2, kind: output, shape index: {}]  }
   0x1   :  { %9 = vsyncpa [#allocation6 + $0x1], 0 }
   0x2   :  { %10 = vsyncpa [#allocation9], 0 }
   0x3   :  { %12 = vsyncpa [#allocation9 + $0x1], 0 }
   0x4   :  { %13 = vsyncpa [#allocation7], 0 }
   0x5   :  { %15 = vsyncpa [#allocation7 + $0x1], 0  ;;  %s822_s9 = smov 0   ;;  %s824_s10 = smov 0  }
   0x6   :  { %s826_s11 = smov 0   ;;  %s828_s12 = smov 0  }
   0x7   :  { %s830_s13 = smov 0   ;;  %s832_s14 = smov 0  }
   0x8 LB: > { %s534_s15 = sadd.s32 4294967295, %s797_s14   ;;  %s535_s16 = sadd.s32 4294967294, %s797_s14   ;;  %s797_s14 = sphi %s832_s14, %s21_s14   ;;  %s793_s13 = sphi %s830_s13, %s1091_s13   ;;  %s789_s12 = sphi %s828_s12, %s1090_s12   ;;  %s785_s11 = sphi %s826_s11, %s1089_s11   ;;  %s781_s10 = sphi %s824_s10, %s1088_s10   ;;  %s777_s9 = sphi %s822_s9, %s1087_s9  }
   0x9   : > { %s40_s17 = sadd.s32 1, %s793_s13  ;;  %s49_s18 = sadd.s32 1, %s785_s11 }
   0xa   : > { %p42_p0 = scmp.ge.s32.totalorder %s40_s17, 2  ;;  %p56_p1 = scmp.ne.s32.totalorder %s785_s11, %s781_s10 }
   0xb   : > { %p57_p2 = scmp.eq.s32.totalorder %s797_s14, 0  ;;  %p62_p3 = scmp.ne.s32.totalorder %s781_s10, %s777_s9 }
   0xc   : > { %s1093_s17 = smov (%p42_p0, %s40_s17), 0  ;;  %p63_p5 = scmp.eq.s32.totalorder %s534_s15, 0 }
   0xd   : > { %p863_p4 = por %p57_p2, %p56_p1  ;;  %s44_s20 = ssub.s32 %s793_s13, %s1093_s17 }
   0xe   : > { %p118_p6 = scmp.eq.s32.totalorder %s534_s15, 1  ;;  %p47_p7 = scmp.eq.s32.totalorder %s44_s20, 0 }
   0xf   : > { %p869_p8 = por %p63_p5, %p62_p3  ;;  %p124_p10 = scmp.eq.s32.totalorder %s535_s16, 1 }
  0x10   : > { %p873_p9 = por %p118_p6, %p56_p1  ;;  %p585_p13 = scmp.lt.s32.totalorder %s797_s14, 2 }
  0x11   : > { %s1076_s21 = scalar_select %p869_p8, 1, 0 }
  0x12   : > { %s1077_s22 = scalar_select %p873_p9, 1, 0 }
  0x13   : > { %s878_s23 = scalar_select %p47_p7, %s785_s11, %s49_s18  }
  0x14   : > { %p880_p11 = por %p124_p10, %p62_p3  ;;  %s887_s25 = sand.u32 1, %s785_s11  }
  0x15   : > { %s538_s26 = sshll.u32 %s887_s25, 3  ;;  %s556_s27 = sshll.u32 %s793_s13, 7 }
  0x16   : > { %s1078_s24 = scalar_select %p880_p11, 1, 0 }
  0x17   : > { %s894_s30 = scalar_lea.hbm %s1070_s0, %s556_s27  ;;  %s148_s3 = scalar_lea.vmem [#allocation5], %s538_s26 }
  0x18   : > { %s158_s4 = sshll.u32 %s148_s3, 4  ;;  %p900_p0 = pnand %p585_p13, %p863_p4  ;;  %s896_s4 = int_to_ptr.vmem [resolvable:$true] %s158_s4 }
  0x19   : > { %s145_s6 = scalar_lea.sflag [#allocation6], %s887_s25  ;;  %s651_s7 = scalar_lea.hbm %s894_s30, 128 }
  0x1a   : > { %p652_p3 = scmp.ne.s32.totalorder %s894_s30, %s651_s7  ;;  %p653_p5 = pneg %p900_p0 }
  0x1b   : > { %s656_s16 = scalar_lea.hbm %s1070_s0, 256  ;;  %p657_p4 = scmp.lt.u32.totalorder %s894_s30, %s1070_s0 }
  0x1c   : > { %p654_p6 = pnand %p653_p5, %p652_p3  ;;  %p658_p10 = scmp.lt.u32.totalorder %s656_s16, %s651_s7 }
  0x1d   : > { %p660_p12 = scmp.lt.u32.totalorder %s651_s7, %s894_s30 }
  0x1e   : > { %p655_p7 = pneg %p654_p6  ;;  %p659_p13 = por %p658_p10, %p657_p4 }
  0x20   : > { %p661_p1 = por %p660_p12, %p659_p13 }
  0x22   : > { %p662_p2 = pnand %p661_p1, %p655_p7 }
  0x24   : > { %665 = shalt.err (!%p662_p2)
}
  0x25   : > { %s666_s20 = scalar_lea.vmem %s896_s4, 128  ;;  %s799_s26 = smov [#allocation5]  }
  0x26   : > { %p667_p3 = scmp.ne.s32.totalorder %s896_s4, %s666_s20  ;;  %s671_s27 = sshll.u32 %s799_s26, 4  ;;  %s672_s27 = int_to_ptr.vmem [resolvable:$false] %s671_s27 }
  0x27   : > { %s673_s28 = scalar_lea.vmem %s672_s27, 256  ;;  %p674_p9 = scmp.lt.s32.totalorder %s896_s4, %s672_s27 }
  0x28   : > { %p669_p6 = pnand %p667_p3, %p653_p5  ;;  %p675_p4 = scmp.lt.s32.totalorder %s673_s28, %s666_s20 }
  0x2a   : > { %p670_p11 = pneg %p669_p6  ;;  %p676_p10 = por %p675_p4, %p674_p9 }
  0x2c   : > { %p677_p12 = pnand %p676_p10, %p670_p11 }
  0x2e   : > { %680 = shalt.err (!%p677_p12)
}
  0x2f   : > { %577 = dma.hbm_to_vmem [thread:$0]  (!%p900_p0), %s894_s30, 128, %s896_s4, %s145_s6  }
  0x30   : > { %p1080_p1 = scmp.lt.s32.totalorder %s797_s14, 3  ;;  %p1081_p2 = scmp.ge.s32.totalorder %s797_s14, 1 }
  0x31   : > { %s541_s3 = sshll.u32 %s887_s25, 6  ;;  %s557_s7 = sshll.u32 %s793_s13, 10 }
  0x32   : > { %p936_p7 = pnand %p1081_p2, %p1080_p1  ;;  %s945_s16 = scalar_lea.hbm %s1071_s1, %s557_s7 }
  0x33   : > { %s169_s18 = scalar_lea.vmem [#allocation8], %s541_s3  ;;  %s166_s30 = scalar_lea.sflag [#allocation9], %s887_s25 }
  0x34   : > { %s181_s19 = sshll.u32 %s169_s18, 4  ;;  %s681_s4 = scalar_lea.hbm %s945_s16, 1024  ;;  %s947_s19 = int_to_ptr.vmem [resolvable:$true] %s181_s19 }
  0x35   : > { %p682_p9 = scmp.ne.s32.totalorder %s945_s16, %s681_s4  ;;  %s686_s26 = scalar_lea.hbm %s1071_s1, 2048 }
  0x36   : > { %p687_p3 = scmp.lt.u32.totalorder %s945_s16, %s1071_s1  ;;  %p688_p6 = scmp.lt.u32.totalorder %s686_s26, %s681_s4 }
  0x37   : > { %p684_p11 = pnand %p682_p9, %p653_p5  ;;  %p690_p10 = scmp.lt.u32.totalorder %s681_s4, %s945_s16 }
  0x38   : > { %p689_p4 = por %p688_p6, %p687_p3 }
  0x39   : > { %p685_p13 = pneg %p684_p11 }
  0x3a   : > { %p691_p12 = por %p690_p10, %p689_p4 }
  0x3c   : > { %p692_p1 = pnand %p691_p12, %p685_p13 }
  0x3e   : > { %695 = shalt.err (!%p692_p1)
}
  0x3f   : > { %s696_s3 = scalar_lea.vmem %s947_s19, 1024  ;;  %s800_s7 = smov [#allocation8]  }
  0x40   : > { %p697_p2 = scmp.ne.s32.totalorder %s947_s19, %s696_s3  ;;  %s701_s8 = sshll.u32 %s800_s7, 4  ;;  %s702_s8 = int_to_ptr.vmem [resolvable:$false] %s701_s8 }
  0x41   : > { %s703_s15 = scalar_lea.vmem %s702_s8, 2048  ;;  %p704_p8 = scmp.lt.s32.totalorder %s947_s19, %s702_s8 }
  0x42   : > { %p699_p9 = pnand %p697_p2, %p653_p5  ;;  %p705_p3 = scmp.lt.s32.totalorder %s703_s15, %s696_s3 }
  0x44   : > { %p700_p11 = pneg %p699_p9  ;;  %p706_p6 = por %p705_p3, %p704_p8 }
  0x46   : > { %p707_p4 = pnand %p706_p6, %p700_p11 }
  0x48   : > { %710 = shalt.err (!%p707_p4)
}
  0x49   : > { %s801_s18 = smov 256   ;;  %s802_s4 = smov 16  }
  0x4a   : > { %580 = dma.hbm_to_vmem [thread:$0]  (!%p900_p0), %s945_s16, 1024, %s947_s19, %s166_s30, %s801_s18, %s801_s18, %s802_s4  }
  0x4b   : > { %193 = sbr.rel (%p936_p7) target bundleno = 695 (0x2b7), region = 28  ;;  %s978_s6 = sand.u32 (!%p936_p7), 1, %s781_s10  }
  0x4c   : > { %s545_s20 = sshll.u32 (!%p936_p7), %s978_s6, 3  ;;  %s196_s26 = scalar_lea.sflag (!%p936_p7), [#allocation6], %s978_s6 }
  0x4d   : > { %s199_s27 = scalar_lea.vmem (!%p936_p7), [#allocation5], %s545_s20  ;;  %p1083_p8 = scmp.ne.s32.totalorder (!%p936_p7), %s1076_s21, 0 }
  0x52   : > { %764 = dma.done.wait (%p1083_p8), %s196_s26, 128  }
  0x53   : > { %766 = vsyncadd (%p1083_p8), %s196_s26, 4294967168  ;;  %s546_s25 = sshll.u32 %s978_s6, 6  ;;  %s205_s5 = scalar_lea.sflag [#allocation9], %s978_s6 }
  0x54   : > { %s988_s29 = scalar_lea.vmem [#allocation8], %s546_s25 }
  0x55   : > { %768 = dma.done.wait (%p1083_p8), %s205_s5, 1024  }
  0x56   : > { %770 = vsyncadd (%p1083_p8), %s205_s5, 4294966272  ;;  %v257_v0 = vlaneseq  ;;  %vm241_vm0 = vcmask 3072   ;;  %v803_v1 = vmov -inf   ;;  %vm281_vm1 = vcmask 1043456   ;;  %v246_v4 = vld [vmem:[%s199_s27] sm:$0xff]  ;;  %v248_v15 = vld [vmem:[%s988_s29 + $0x8] sm:$0xff] }
  0x57   : > { %242 = vst.msk [vmem:[#allocation2] sm:$0xf] %vm241_vm0, %v803_v1  ;;  %v268_v5 = vcombine.high %v246_v4, %v246_v4  ;;  %v282_v6 = vsel %vm281_vm1, %v246_v4, -inf  ;;  %v804_v10 = vmov 0   ;;  %v805_v11 = vmov 0.0   ;;  %v250_v16 = vld [vmem:[%s988_s29 + $0x18] sm:$0xff] }
  0x58   : > { %v258_v2 = vand.u32 127, %v257_v0  ;;  %640 = vset.pattern.permute.xlu0 %v804_v10  ;;  %641 = vset.pattern.permute.xlu1 %v804_v10  ;;  %243 = vst.msk [vmem:[#allocation3] sm:$0xf] %vm241_vm0, %v805_v11  ;;  %v558_v17 = vpack.c.bf16 %v250_v16, %v248_v15  ;;  %v247_v18 = vld [vmem:[%s988_s29] sm:$0xff]  ;;  %v249_v19 = vld [vmem:[%s988_s29 + $0x10] sm:$0xff]  ;;  %v252_v22 = vld [vmem:[%s988_s29 + $0x28] sm:$0xff] }
  0x59   : > { %v561_v21 = vpack.c.bf16 %v249_v19, %v247_v18  ;;  %v254_v23 = vld [vmem:[%s988_s29 + $0x38] sm:$0xff]  ;;  %v251_v24 = vld [vmem:[%s988_s29 + $0x20] sm:$0xff]  ;;  %v253_v26 = vld [vmem:[%s988_s29 + $0x30] sm:$0xff]  ;;  %vm244_vm4 = vcmask 257024   ;;  %s547_s21 = sshll.u32 %s978_s6, 2  ;;  %s553_s16 = sshll.u32 %s789_s12, 6 }
  0x5a   : > { %v259_v3 = vadd.s32 128, %v258_v2  ;;  %v563_v25 = vpack.c.bf16 %v254_v23, %v252_v22  ;;  %v566_v27 = vpack.c.bf16 %v253_v26, %v251_v24  ;;  %245 = vst.msk [vmem:[#allocation4] sm:$0xf] %vm244_vm4, %v805_v11  ;;  %s233_s19 = scalar_lea.vmem [#allocation10], %s547_s21  ;;  %s1020_s7 = scalar_lea.hbm %s1072_s2, %s553_s16 }
  0x5b   : > { %s421_s30 = sshll.u32 %s233_s19, 4  ;;  %s407_s8 = scalar_lea.sflag [#allocation7], %s978_s6  ;;  %s1022_s30 = int_to_ptr.vmem [resolvable:$true] %s421_s30 }
  0x5c   : > { %vm262_vm2 = vcmp.lt.s32.totalorder %v259_v3, 255  ;;  %s711_s15 = scalar_lea.vmem %s1022_s30, 64  ;;  %p1084_p5 = scmp.ne.s32.totalorder %s1077_s22, 0 }
  0x5d   : > { %v271_v7 = vsel %vm262_vm2, %v268_v5, -1e+30  ;;  %vm559_vm3 = vmpackc.low %vm262_vm2, %vm262_vm2  ;;  %p712_p0 = scmp.ne.s32.totalorder %s1022_s30, %s711_s15  ;;  %s806_s12 = smov [#allocation10]  }
  0x5e   : > { %v283_v8 = vsel %vm281_vm1, %v271_v7, -inf  ;;  %v280_v12 = vld [vmem:[#allocation2] sm:$0xf]  ;;  %560 = vmatprep.subr.msk.bf16.mxu0 %vm559_vm3, %v558_v17  ;;  %s715_s18 = sshll.u32 %s806_s12, 4  ;;  %s716_s18 = int_to_ptr.vmem [resolvable:$false] %s715_s18 }
  0x5f   : > { %v284_v9 = vmax.f32 %v282_v6, %v283_v8  ;;  %562 = vmatpush1.bf16.xpose.msra.mxu0 %v561_v21  ;;  %v302_v40 = vld [vmem:[#allocation3] sm:$0xf]  ;;  %p713_p7 = pnand %p712_p0, %p1084_p5  ;;  %s717_s4 = scalar_lea.vmem %s716_s18, 128 }
  0x60   : > { %565 = vmatprep.subr.msk.bf16.mxu0 %vm559_vm3, %v563_v25  ;;  %p718_p10 = scmp.lt.s32.totalorder %s1022_s30, %s716_s18  ;;  %p719_p12 = scmp.lt.s32.totalorder %s717_s4, %s711_s15 }
  0x61   : > { %285 = vmax.xlane.f32.xlu0 %v284_v9  ;;  %v382_v46 = vld [vmem:[#allocation4] sm:$0xf]  ;;  %p714_p13 = pneg %p713_p7 }
  0x62   : > { %p720_p1 = por %p719_p12, %p718_p10 }
  0x64   : > { %p721_p2 = pnand %p720_p1, %p714_p13 }
  0x67   : > { %567 = vmatpush1.bf16.xpose.msra.mxu0 %v566_v27 }
  0xee   : > { %v286_v13 = vpop.xlane.xlu0 %285 }
  0xef   : > { %v287_v14 = vmax.f32 %v280_v12, %v286_v13 }
  0xf1   : > { %v288_v20 = vsub.f32 %v280_v12, %v287_v14  ;;  %392 = vst.msk [vmem:[#allocation2] sm:$0xf] %vm241_vm0, %v287_v14  ;;  %293 = vperm.xlu0 %640, %v287_v14  }
  0xf3   : > { %v289_v38 = vmul.f32 1.442695, %v288_v20 }
 0x170   : > { %v294_v28 = vpop.permute.xlu0 %293 }
 0x171   : > { %v296_v29 = vsub.f32 %v246_v4, %v294_v28  ;;  %v297_v30 = vsub.f32 %v271_v7, %v294_v28 }
 0x173   : > { %v298_v31 = vmul.f32 1.442695, %v296_v29  ;;  %v300_v32 = vmul.f32 1.442695, %v297_v30 }
 0x175   : > { %643 = vpow2.f32 %v298_v31 }
 0x176   : > { %645 = vpow2.f32 %v300_v32 }
 0x177   : > { %647 = vpow2.f32 %v289_v38 }
 0x17f   : > { %v644_v33 = vpop.eup %643 }
 0x180   : > { %v646_v34 = vpop.eup %645  ;;  %v304_v35 = vsel %vm281_vm1, %v644_v33, 0.0 }
 0x181   : > { %376 = vmatprep.mubr.f32.mxu0 %v646_v34  ;;  %v305_v36 = vsel %vm281_vm1, %v646_v34, 0.0  ;;  %v648_v39 = vpop.eup %647 }
 0x182   : > { %377 = vmatmul.mubr.f32.vlgmr.msra.gmra.mrb[0].mxu0 %v644_v33  ;;  %v306_v37 = vadd.f32 %v305_v36, %v304_v35  ;;  %v303_v41 = vmul.f32 %v648_v39, %v302_v40 }
 0x184   : > { %307 = vadd.xlane.f32.xlu1 %v306_v37 }
 0x195   : > { %385 = vperm.xlu1 %641, %v648_v39  }
 0x211   : > { %v308_v42 = vpop.xlane.xlu1 %307 }
 0x212   : > { %v309_v43 = vadd.f32 %v308_v42, %v303_v41 }
 0x214   : > { %311 = vst.msk [vmem:[#allocation3] sm:$0xf] %vm241_vm0, %v309_v43 }
 0x215   : > { %v386_v47 = vpop.permute.xlu1 %385 }
 0x216   : > { %v388_v48 = vmul.f32 %v386_v47, %v382_v46 }
 0x21b   : > { %v396_v44 = vld [vmem:[#allocation3] sm:$0xf] }
 0x21c   : > { %649 = vrcp.f32 %v396_v44 }
 0x226   : > { %v650_v45 = vpop.eup %649 }
 0x227   : > { %401 = vperm.xlu1 %641, %v650_v45  }
 0x255   : > { %v378_v49 = vpop.f32.mrb[0].mxu0 }
 0x256   : > { %v389_v50 = vadd.f32 %v388_v48, %v378_v49  ;;  %v380_v51 = vpop.f32.mrb[1].mxu0 }
 0x258   : > { %391 = vst.msk [vmem:[#allocation4] sm:$0xf] %vm244_vm4, %v389_v50 }
 0x25f   : > { %v398_v52 = vld [vmem:[#allocation4] sm:$0xf] }
 0x2a6   : > { %v402_v53 = vpop.permute.xlu1 %401 }
 0x2a7   : > { %v404_v54 = vmul.f32 %v402_v53, %v398_v52 }
 0x2a9   : > { %405 = vst.msk [vmem:[%s233_s19] sm:$0xf] %vm244_vm4, %v404_v54 }
 0x2aa   : > { %724 = shalt.err (!%p721_p2)
}
 0x2ab   : > { %s725_s6 = scalar_lea.hbm %s1020_s7, 64  ;;  %s729_s27 = scalar_lea.hbm %s1072_s2, 128 }
 0x2ac   : > { %p726_p9 = scmp.ne.s32.totalorder %s1020_s7, %s725_s6  ;;  %p730_p6 = scmp.lt.u32.totalorder %s1020_s7, %s1072_s2 }
 0x2ad   : > { %p731_p4 = scmp.lt.u32.totalorder %s729_s27, %s725_s6  ;;  %p733_p0 = scmp.lt.u32.totalorder %s725_s6, %s1020_s7 }
 0x2ae   : > { %p727_p11 = pnand %p726_p9, %p1084_p5 }
 0x2af   : > { %p732_p8 = por %p731_p4, %p730_p6 }
 0x2b0   : > { %p728_p3 = pneg %p727_p11 }
 0x2b1   : > { %p734_p7 = por %p733_p0, %p732_p8 }
 0x2b3   : > { %p735_p13 = pnand %p734_p7, %p728_p3 }
 0x2b5   : > { %738 = shalt.err (!%p735_p13)
}
 0x2b6   : > { %572 = dma.vmem_to_hbm [thread:$0]  (%p1084_p5), %s1022_s30, 64, %s1020_s7, %s407_s8  }
 0x2b7 PF: > { %s433_s29 = sand.u32 1, %s777_s9   ;;  %p1085_p10 = scmp.ne.s32.totalorder %s1078_s24, 0 }
 0x2b8   : > { %p1086_p12 = scmp.ge.s32.totalorder %s797_s14, 2  ;;  %s434_s21 = scalar_lea.sflag [#allocation7], %s433_s29 }
 0x2ba   : > { %p582_p1 = pnand %p1086_p12, %p1085_p10 }
 0x2bc   : > { %772 = dma.done.wait (!%p582_p1), %s434_s21, 64  }
 0x2bd   : > { %774 = vsyncadd (!%p582_p1), %s434_s21, 4294967232  ;;  %s21_s14 = sadd.s32 1, %s797_s14   ;;  %s1087_s9 = smov %s781_s10 }
 0x2be   : > { %p18_p2 = scmp.ge.s32.totalorder %s21_s14, 4   ;;  %s1088_s10 = smov %s785_s11 }
 0x2bf   : > { %s1089_s11 = smov %s878_s23  ;;  %s1090_s12 = smov %s793_s13 }
 0x2c0   : > { %s1091_s13 = smov %s1093_s17  ;;  %20 = sbr.rel (!%p18_p2) target bundleno = 8 (0x8), region = 94 }
 0x2c7   :  { %439 = vsyncpa [#allocation6], 1 }
 0x2c8   :  { %441 = vsyncpa [#allocation6 + $0x1], 1 }
 0x2c9   :  { %442 = vsyncpa [#allocation9], 1 }
 0x2ca   :  { %444 = vsyncpa [#allocation9 + $0x1], 1 }
 0x2cb   :  { %445 = vsyncpa [#allocation7], 1 }
 0x2cc   :  { %447 = vsyncpa [#allocation7 + $0x1], 1 }

</bundles_post_ra>
